<compile_context>
chip_gen: v7x
topology: tpu7x:2x2x1
jax: 0.10.0
libtpu: 0.0.40
codegen_flags: <defaults>
</compile_context>

<pallas_src>
import functools
import math

import jax
import jax.numpy as jnp
from jax.experimental import pallas as pl
from jax.experimental.pallas import tpu as pltpu

EPS = 1e-6


# ------------------------------- tiling utils --------------------------------

def _pick_tile(dim, target, align):
    """Largest tile <= target that divides `dim` and is a multiple of `align`,
    falling back to the full dim (full-dim blocks are always legal)."""
    if dim <= target:
        return dim
    t = (target // align) * align
    while t >= align:
        if dim % t == 0:
            return t
        t -= align
    return dim


def _layernorm_f32(x, g_ref, b_ref):
    """Annotated-Transformer LayerNorm: unbiased std, eps added to std."""
    d = x.shape[-1]
    mean = jnp.mean(x, axis=-1, keepdims=True)
    diff = x - mean
    std = jnp.sqrt(jnp.sum(diff * diff, axis=-1, keepdims=True) / (d - 1))
    return g_ref[...].astype(jnp.float32) * diff / (std + EPS) + b_ref[...].astype(jnp.float32)


# ------------------------------- Pallas kernels -------------------------------

def _make_proj_kernel(n_out, apply_ln):
    """(optional LN) + n_out fused linear projections sharing the input tile."""
    def kernel(*refs):
        idx = 0
        x_ref = refs[idx]; idx += 1
        if apply_ln:
            g_ref, b_ref = refs[idx], refs[idx + 1]; idx += 2
        w_refs = refs[idx:idx + n_out]; idx += n_out
        bias_refs = refs[idx:idx + n_out]; idx += n_out
        o_refs = refs[idx:]

        x = x_ref[...].astype(jnp.float32)
        if apply_ln:
            x = _layernorm_f32(x, g_ref, b_ref)
        xn = x.astype(jnp.bfloat16)                       # bf16 MXU operand
        for w_ref, bias_ref, o_ref in zip(w_refs, bias_refs, o_refs):
            y = jnp.dot(xn, w_ref[...], preferred_element_type=jnp.float32)
            y = y + bias_ref[...].astype(jnp.float32)
            o_ref[...] = y.astype(o_ref.dtype)
    return kernel


def _linear_residual_kernel(x_ref, w_ref, b_ref, r_ref, o_ref):
    """out = x @ W + b + residual  (output projection W_o with fused residual)."""
    y = jnp.dot(x_ref[...].astype(jnp.bfloat16), w_ref[...],
                preferred_element_type=jnp.float32)
    y = y + b_ref[...].astype(jnp.float32) + r_ref[...].astype(jnp.float32)
    o_ref[...] = y.astype(o_ref.dtype)


def _attention_kernel(q_ref, k_ref, v_ref, m_ref, o_ref, *, n_heads, dk, scale):
    """All heads of one (batch, q-row-tile): softmax(QK^T*scale + mask) V,
    heads concatenated into a lane-dense (tq, d_model) store."""
    q = q_ref[...].astype(jnp.float32)        # (tq, D)
    k = k_ref[...].astype(jnp.float32)        # (Sk, D)
    v = v_ref[...]                            # (Sk, D)
    mask = m_ref[0]                           # (1 or tq, Sk); broadcasts over rows
    neg = jnp.float32(-1e9)

    outs = []
    for h in range(n_heads):
        sl = slice(h * dk, (h + 1) * dk)
        qh = q[:, sl].astype(jnp.bfloat16)
        kh = k[:, sl].astype(jnp.bfloat16)
        s = jnp.einsum('qd,kd->qk', qh, kh,
                       preferred_element_type=jnp.float32) * jnp.float32(scale)
        s = jnp.where(mask == 0, neg, s)
        s = s - jnp.max(s, axis=-1, keepdims=True)
        p = jnp.exp(s)
        denom = jnp.sum(p, axis=-1, keepdims=True)
        p = p * pl.reciprocal(denom, approx=True)
        outs.append(jnp.dot(p.astype(jnp.bfloat16), v[:, sl].astype(jnp.bfloat16),
                            preferred_element_type=jnp.float32))
    out = jnp.concatenate(outs, axis=-1)      # (tq, D) lane-dense
    o_ref[...] = out.astype(o_ref.dtype)


def _ffn_kernel(x_ref, g_ref, b_ref, w1_ref, b1_ref, w2_ref, b2_ref, o_ref, acc_ref):
    """Fused pre-norm FFN: LN(x) -> relu(.@W1+b1) -> .@W2 (+b2) + x.
    d_ff is tiled on the last grid axis; the hidden activation lives in VMEM only."""
    f = pl.program_id(1)

    @pl.when(f == 0)
    def _():
        acc_ref[...] = jnp.zeros_like(acc_ref)

    x = x_ref[...].astype(jnp.float32)
    xn = _layernorm_f32(x, g_ref, b_ref).astype(jnp.bfloat16)
    h = jnp.dot(xn, w1_ref[...], preferred_element_type=jnp.float32)
    h = jnp.maximum(h + b1_ref[...].astype(jnp.float32), 0.0)
    acc_ref[...] += jnp.dot(h.astype(jnp.bfloat16), w2_ref[...],
                            preferred_element_type=jnp.float32)

    @pl.when(f == pl.num_programs(1) - 1)
    def _():
        o_ref[...] = (acc_ref[...] + b2_ref[...].astype(jnp.float32) + x).astype(o_ref.dtype)


# -------------------------------- wrappers ------------------------------------

def ln_proj(x2d, gamma, beta, ws, bs, *, apply_ln):
    """Fused (optional LN) + multi-head projection(s). Returns list of (M, N)."""
    M, D = x2d.shape
    n_out = len(ws)
    N = ws[0].shape[1]
    tm = _pick_tile(M, 512, 8)
    tn = _pick_tile(N, 256, 128)
    grid = (M // tm, N // tn)

    in_specs = [pl.BlockSpec((tm, D), lambda i, j: (i, 0))]
    args = [x2d]
    if apply_ln:
        in_specs += [pl.BlockSpec((1, D), lambda i, j: (0, 0))] * 2
        args += [gamma.reshape(1, D), beta.reshape(1, D)]
    in_specs += [pl.BlockSpec((D, tn), lambda i, j: (0, j))] * n_out
    args += list(ws)
    in_specs += [pl.BlockSpec((1, tn), lambda i, j: (0, j))] * n_out
    args += [b.reshape(1, N) for b in bs]

    out_specs = [pl.BlockSpec((tm, tn), lambda i, j: (i, j))] * n_out
    out_shape = [jax.ShapeDtypeStruct((M, N), x2d.dtype)] * n_out

    outs = pl.pallas_call(
        _make_proj_kernel(n_out, apply_ln),
        out_shape=out_shape,
        grid=grid,
        in_specs=in_specs,
        out_specs=out_specs,
        compiler_params=pltpu.CompilerParams(
            dimension_semantics=("parallel", "parallel")),
    )(*args)
    return list(outs) if isinstance(outs, (list, tuple)) else [outs]


def linear_residual(ctx2d, w, b, resid2d):
    M, D = ctx2d.shape
    N = w.shape[1]
    tm = _pick_tile(M, 512, 8)
    tn = _pick_tile(N, 256, 128)
    grid = (M // tm, N // tn)
    return pl.pallas_call(
        _linear_residual_kernel,
        out_shape=jax.ShapeDtypeStruct((M, N), resid2d.dtype),
        grid=grid,
        in_specs=[pl.BlockSpec((tm, D), lambda i, j: (i, 0)),
                  pl.BlockSpec((D, tn), lambda i, j: (0, j)),
                  pl.BlockSpec((1, tn), lambda i, j: (0, j)),
                  pl.BlockSpec((tm, tn), lambda i, j: (i, j))],
        out_specs=pl.BlockSpec((tm, tn), lambda i, j: (i, j)),
        compiler_params=pltpu.CompilerParams(
            dimension_semantics=("parallel", "parallel")),
    )(ctx2d, w, b.reshape(1, N), resid2d)


def attention(q2d, k2d, v2d, mask, B, Sq, Sk, n_heads):
    """q2d: (B*Sq, D), k2d/v2d: (B*Sk, D), mask: (B, 1 or Sq, Sk).
    Returns lane-dense (B*Sq, D) context (before W_o)."""
    D = q2d.shape[1]
    dk = D // n_heads
    scale = 1.0 / math.sqrt(dk)
    tq = _pick_tile(Sq, 256, 8)
    nq = Sq // tq

    mq = mask.shape[1]
    if mq == Sq:
        mblk = tq
        mask_map = lambda b, qi: (b, qi, 0)
    else:  # (B, 1, Sk) padding mask, broadcast over query rows in-kernel
        mblk = 1
        mask_map = lambda b, qi: (b, 0, 0)

    kernel = functools.partial(_attention_kernel, n_heads=n_heads, dk=dk, scale=scale)
    # TODO(synk): for very long Sk add flash-style KV tiling (online softmax) to
    # bound the (tq, Sk) score tile under v7x's 64 MiB VMEM.
    return pl.pallas_call(
        kernel,
        out_shape=jax.ShapeDtypeStruct((B * Sq, D), q2d.dtype),
        grid=(B, nq),
        in_specs=[pl.BlockSpec((tq, D), lambda b, qi: (b * nq + qi, 0)),
                  pl.BlockSpec((Sk, D), lambda b, qi: (b, 0)),
                  pl.BlockSpec((Sk, D), lambda b, qi: (b, 0)),
                  pl.BlockSpec((1, mblk, Sk), mask_map)],
        out_specs=pl.BlockSpec((tq, D), lambda b, qi: (b * nq + qi, 0)),
        compiler_params=pltpu.CompilerParams(
            dimension_semantics=("parallel", "parallel")),
    )(q2d, k2d, v2d, mask)


def ffn(x2d, gamma, beta, w1, b1, w2, b2):
    M, D = x2d.shape
    F = w1.shape[1]
    tm = _pick_tile(M, 512, 8)
    tf = _pick_tile(F, 512, 128)
    grid = (M // tm, F // tf)
    return pl.pallas_call(
        _ffn_kernel,
        out_shape=jax.ShapeDtypeStruct((M, D), x2d.dtype),
        grid=grid,
        in_specs=[pl.BlockSpec((tm, D), lambda i, f: (i, 0)),
                  pl.BlockSpec((1, D), lambda i, f: (0, 0)),
                  pl.BlockSpec((1, D), lambda i, f: (0, 0)),
                  pl.BlockSpec((D, tf), lambda i, f: (0, f)),
                  pl.BlockSpec((1, tf), lambda i, f: (0, f)),
                  pl.BlockSpec((tf, D), lambda i, f: (f, 0)),
                  pl.BlockSpec((1, D), lambda i, f: (0, 0))],
        out_specs=pl.BlockSpec((tm, D), lambda i, f: (i, 0)),
        scratch_shapes=[pltpu.VMEM((tm, D), jnp.float32)],
        compiler_params=pltpu.CompilerParams(
            dimension_semantics=("parallel", "arbitrary")),
    )(x2d, gamma.reshape(1, D), beta.reshape(1, D),
      w1, b1.reshape(1, F), w2, b2.reshape(1, D))


# ------------------------------- module logic ---------------------------------

def decoder_layer(params, x, memory, src_mask, tgt_mask):
    B, S, D = x.shape
    Sm = memory.shape[1]
    H = params["n_heads"]
    x2 = x.reshape(B * S, D)
    mem2 = memory.reshape(B * Sm, D)

    # --- sublayer 1: x = x + self_attn(norm1(x), ., ., tgt_mask) ---
    sa = params["self_attn"]
    q, k, v = ln_proj(x2, params["ln1_g"], params["ln1_b"],
                      (sa["wq"], sa["wk"], sa["wv"]),
                      (sa["bq"], sa["bk"], sa["bv"]), apply_ln=True)
    ctx = attention(q, k, v, tgt_mask, B, S, S, H)
    x2 = linear_residual(ctx, sa["wo"], sa["bo"], x2)

    # --- sublayer 2: x = x + src_attn(norm2(x), memory, memory, src_mask) ---
    ca = params["src_attn"]
    (q,) = ln_proj(x2, params["ln2_g"], params["ln2_b"],
                   (ca["wq"],), (ca["bq"],), apply_ln=True)
    k, v = ln_proj(mem2, None, None,
                   (ca["wk"], ca["wv"]), (ca["bk"], ca["bv"]), apply_ln=False)
    ctx = attention(q, k, v, src_mask, B, S, Sm, H)
    x2 = linear_residual(ctx, ca["wo"], ca["bo"], x2)

    # --- sublayer 3: x = x + feed_forward(norm3(x)) (fully fused FFN) ---
    x2 = ffn(x2, params["ln3_g"], params["ln3_b"],
             params["ff_w1"], params["ff_b1"], params["ff_w2"], params["ff_b2"])

    # TODO(synk): nn.Dropout modeled as identity (eval-mode / deterministic).
    return x2.reshape(B, S, D)


def init_params(key, d_model, n_heads, d_ff):
    ks = jax.random.split(key, 12)

    def w(k, shape):
        return (jax.random.normal(k, shape, jnp.float32)
                / math.sqrt(shape[0])).astype(jnp.bfloat16)   # weights stored bf16

    def attn(k4):
        return {"wq": w(k4[0], (d_model, d_model)), "bq": jnp.zeros((d_model,), jnp.float32),
                "wk": w(k4[1], (d_model, d_model)), "bk": jnp.zeros((d_model,), jnp.float32),
                "wv": w(k4[2], (d_model, d_model)), "bv": jnp.zeros((d_model,), jnp.float32),
                "wo": w(k4[3], (d_model, d_model)), "bo": jnp.zeros((d_model,), jnp.float32)}

    return {
        "n_heads": n_heads,
        "ln1_g": jnp.ones((d_model,), jnp.float32), "ln1_b": jnp.zeros((d_model,), jnp.float32),
        "ln2_g": jnp.ones((d_model,), jnp.float32), "ln2_b": jnp.zeros((d_model,), jnp.float32),
        "ln3_g": jnp.ones((d_model,), jnp.float32), "ln3_b": jnp.zeros((d_model,), jnp.float32),
        "self_attn": attn(ks[0:4]),
        "src_attn": attn(ks[4:8]),
        "ff_w1": w(ks[8], (d_model, d_ff)), "ff_b1": jnp.zeros((d_ff,), jnp.float32),
        "ff_w2": w(ks[9], (d_ff, d_model)), "ff_b2": jnp.zeros((d_model,), jnp.float32),
    }


if __name__ == "__main__":
    B, S_TGT, S_SRC, D, H, D_FF = 2, 8, 8, 32, 4, 64

    key = jax.random.PRNGKey(0)
    k_x, k_mem, k_p = jax.random.split(key, 3)
    x = jax.random.normal(k_x, (B, S_TGT, D), jnp.float32)
    memory = jax.random.normal(k_mem, (B, S_SRC, D), jnp.float32)

    # causal target mask (B, S_tgt, S_tgt); padding-style source mask (B, 1, S_src)
    tgt_mask = jnp.broadcast_to(
        jnp.tril(jnp.ones((S_TGT, S_TGT), jnp.float32)), (B, S_TGT, S_TGT))
    src_mask = jnp.ones((B, 1, S_SRC), jnp.float32)

    params = init_params(k_p, D, H, D_FF)

    out = decoder_layer(params, x, memory, src_mask, tgt_mask)
    jax.block_until_ready(out)
    assert out.shape == (B, S_TGT, D) and out.dtype == jnp.float32
    assert bool(jnp.all(jnp.isfinite(out)))
    print("KERNEL_OK")
</pallas_src>

<mosaic_0001>
module attributes {stable_mosaic.version = 11 : i64} {
  func.func @kernel(%arg0: i32, %arg1: i32, %arg2: memref<16x32xf32, #tpu.memory_space<vmem>>, %arg3: memref<1x32xf32, #tpu.memory_space<vmem>>, %arg4: memref<1x32xf32, #tpu.memory_space<vmem>>, %arg5: memref<32x32xbf16, #tpu.memory_space<vmem>>, %arg6: memref<32x32xbf16, #tpu.memory_space<vmem>>, %arg7: memref<32x32xbf16, #tpu.memory_space<vmem>>, %arg8: memref<1x32xf32, #tpu.memory_space<vmem>>, %arg9: memref<1x32xf32, #tpu.memory_space<vmem>>, %arg10: memref<1x32xf32, #tpu.memory_space<vmem>>, %arg11: memref<16x32xf32, #tpu.memory_space<vmem>>, %arg12: memref<16x32xf32, #tpu.memory_space<vmem>>, %arg13: memref<16x32xf32, #tpu.memory_space<vmem>>) attributes {dimension_semantics = [#tpu.dimension_semantics<parallel>, #tpu.dimension_semantics<parallel>], iteration_bounds = array<i64: 1, 1>, scalar_prefetch = 0 : i64, scratch_operands = 0 : i64, tpu.core_type = #tpu.core_type<tc>, window_params = [{transform_indices = @transform_0, window_bounds = array<i64: 16, 32>}, {pipeline_mode = #tpu.pipeline_mode<synchronous>, transform_indices = @transform_1, window_bounds = array<i64: 1, 32>}, {pipeline_mode = #tpu.pipeline_mode<synchronous>, transform_indices = @transform_2, window_bounds = array<i64: 1, 32>}, {transform_indices = @transform_3, window_bounds = array<i64: 32, 32>}, {transform_indices = @transform_4, window_bounds = array<i64: 32, 32>}, {transform_indices = @transform_5, window_bounds = array<i64: 32, 32>}, {transform_indices = @transform_6, window_bounds = array<i64: 1, 32>}, {transform_indices = @transform_7, window_bounds = array<i64: 1, 32>}, {transform_indices = @transform_8, window_bounds = array<i64: 1, 32>}, {transform_indices = @transform_9, window_bounds = array<i64: 16, 32>}, {transform_indices = @transform_10, window_bounds = array<i64: 16, 32>}, {transform_indices = @transform_11, window_bounds = array<i64: 16, 32>}]} {
    %c0 = arith.constant 0 : index
    %c0_0 = arith.constant 0 : index
    %0 = vector.load %arg2[%c0, %c0_0] : memref<16x32xf32, #tpu.memory_space<vmem>>, vector<16x32xf32>
    %cst = arith.constant dense<0.000000e+00> : vector<16xf32>
    %1 = vector.multi_reduction <add>, %0, %cst [1] : vector<16x32xf32> to vector<16xf32>
    %2 = vector.shape_cast %1 : vector<16xf32> to vector<16x1xf32>
    %cst_1 = arith.constant 3.200000e+01 : f32
    %3 = vector.broadcast %cst_1 : f32 to vector<16x1xf32>
    %4 = arith.divf %2, %3 : vector<16x1xf32>
    %5 = vector.broadcast %4 : vector<16x1xf32> to vector<16x32xf32>
    %6 = arith.subf %0, %5 : vector<16x32xf32>
    %7 = arith.mulf %6, %6 : vector<16x32xf32>
    %cst_2 = arith.constant dense<0.000000e+00> : vector<16xf32>
    %8 = vector.multi_reduction <add>, %7, %cst_2 [1] : vector<16x32xf32> to vector<16xf32>
    %9 = vector.shape_cast %8 : vector<16xf32> to vector<16x1xf32>
    %cst_3 = arith.constant 3.100000e+01 : f32
    %10 = vector.broadcast %cst_3 : f32 to vector<16x1xf32>
    %11 = arith.divf %9, %10 : vector<16x1xf32>
    %12 = math.sqrt %11 : vector<16x1xf32>
    %c0_4 = arith.constant 0 : index
    %c0_5 = arith.constant 0 : index
    %13 = vector.load %arg3[%c0_4, %c0_5] : memref<1x32xf32, #tpu.memory_space<vmem>>, vector<1x32xf32>
    %14 = vector.broadcast %13 : vector<1x32xf32> to vector<16x32xf32>
    %15 = arith.mulf %14, %6 : vector<16x32xf32>
    %cst_6 = arith.constant 9.99999997E-7 : f32
    %16 = vector.broadcast %cst_6 : f32 to vector<16x1xf32>
    %17 = arith.addf %12, %16 : vector<16x1xf32>
    %18 = vector.broadcast %17 : vector<16x1xf32> to vector<16x32xf32>
    %19 = arith.divf %15, %18 : vector<16x32xf32>
    %c0_7 = arith.constant 0 : index
    %c0_8 = arith.constant 0 : index
    %20 = vector.load %arg4[%c0_7, %c0_8] : memref<1x32xf32, #tpu.memory_space<vmem>>, vector<1x32xf32>
    %21 = vector.broadcast %20 : vector<1x32xf32> to vector<16x32xf32>
    %22 = arith.addf %19, %21 : vector<16x32xf32>
    %23 = arith.truncf %22 : vector<16x32xf32> to vector<16x32xbf16>
    %c0_9 = arith.constant 0 : index
    %c0_10 = arith.constant 0 : index
    %24 = vector.load %arg5[%c0_9, %c0_10] : memref<32x32xbf16, #tpu.memory_space<vmem>>, vector<32x32xbf16>
    %cst_11 = arith.constant dense<0.000000e+00> : vector<16x32xf32>
    %25 = tpu.matmul %23, %24, %cst_11 {dimension_numbers = #tpu.dot_dimension_numbers<[1], [0], [0], [1], [0, 0, 1, 1], [], []>} : vector<16x32xbf16>, vector<32x32xbf16>, vector<16x32xf32> -> vector<16x32xf32>
    %c0_12 = arith.constant 0 : index
    %c0_13 = arith.constant 0 : index
    %26 = vector.load %arg8[%c0_12, %c0_13] : memref<1x32xf32, #tpu.memory_space<vmem>>, vector<1x32xf32>
    %27 = vector.broadcast %26 : vector<1x32xf32> to vector<16x32xf32>
    %28 = arith.addf %25, %27 : vector<16x32xf32>
    %c0_14 = arith.constant 0 : index
    %c0_15 = arith.constant 0 : index
    %29 = vector.load %arg11[%c0_14, %c0_15] : memref<16x32xf32, #tpu.memory_space<vmem>>, vector<16x32xf32>
    tpu.vector_store %arg11[%c0_14, %c0_15], %28 {strides = array<i32>} : memref<16x32xf32, #tpu.memory_space<vmem>>, vector<16x32xf32>,
    %c0_16 = arith.constant 0 : index
    %c0_17 = arith.constant 0 : index
    %30 = vector.load %arg6[%c0_16, %c0_17] : memref<32x32xbf16, #tpu.memory_space<vmem>>, vector<32x32xbf16>
    %cst_18 = arith.constant dense<0.000000e+00> : vector<16x32xf32>
    %31 = tpu.matmul %23, %30, %cst_18 {dimension_numbers = #tpu.dot_dimension_numbers<[1], [0], [0], [1], [0, 0, 1, 1], [], []>} : vector<16x32xbf16>, vector<32x32xbf16>, vector<16x32xf32> -> vector<16x32xf32>
    %c0_19 = arith.constant 0 : index
    %c0_20 = arith.constant 0 : index
    %32 = vector.load %arg9[%c0_19, %c0_20] : memref<1x32xf32, #tpu.memory_space<vmem>>, vector<1x32xf32>
    %33 = vector.broadcast %32 : vector<1x32xf32> to vector<16x32xf32>
    %34 = arith.addf %31, %33 : vector<16x32xf32>
    %c0_21 = arith.constant 0 : index
    %c0_22 = arith.constant 0 : index
    %35 = vector.load %arg12[%c0_21, %c0_22] : memref<16x32xf32, #tpu.memory_space<vmem>>, vector<16x32xf32>
    tpu.vector_store %arg12[%c0_21, %c0_22], %34 {strides = array<i32>} : memref<16x32xf32, #tpu.memory_space<vmem>>, vector<16x32xf32>,
    %c0_23 = arith.constant 0 : index
    %c0_24 = arith.constant 0 : index
    %36 = vector.load %arg7[%c0_23, %c0_24] : memref<32x32xbf16, #tpu.memory_space<vmem>>, vector<32x32xbf16>
    %cst_25 = arith.constant dense<0.000000e+00> : vector<16x32xf32>
    %37 = tpu.matmul %23, %36, %cst_25 {dimension_numbers = #tpu.dot_dimension_numbers<[1], [0], [0], [1], [0, 0, 1, 1], [], []>} : vector<16x32xbf16>, vector<32x32xbf16>, vector<16x32xf32> -> vector<16x32xf32>
    %c0_26 = arith.constant 0 : index
    %c0_27 = arith.constant 0 : index
    %38 = vector.load %arg10[%c0_26, %c0_27] : memref<1x32xf32, #tpu.memory_space<vmem>>, vector<1x32xf32>
    %39 = vector.broadcast %38 : vector<1x32xf32> to vector<16x32xf32>
    %40 = arith.addf %37, %39 : vector<16x32xf32>
    %c0_28 = arith.constant 0 : index
    %c0_29 = arith.constant 0 : index
    %41 = vector.load %arg13[%c0_28, %c0_29] : memref<16x32xf32, #tpu.memory_space<vmem>>, vector<16x32xf32>
    tpu.vector_store %arg13[%c0_28, %c0_29], %40 {strides = array<i32>} : memref<16x32xf32, #tpu.memory_space<vmem>>, vector<16x32xf32>,
    return
  }
  func.func @transform_0(%arg0: i32, %arg1: i32) -> (i32, i32) {
    %c0_i32 = arith.constant 0 : i32
    %c0_i32_0 = arith.constant 0 : i32
    return %arg0, %c0_i32 : i32, i32
  }
  func.func @transform_1(%arg0: i32, %arg1: i32) -> (i32, i32) {
    %c0_i32 = arith.constant 0 : i32
    %c0_i32_0 = arith.constant 0 : i32
    %c0_i32_1 = arith.constant 0 : i32
    return %c0_i32, %c0_i32_0 : i32, i32
  }
  func.func @transform_2(%arg0: i32, %arg1: i32) -> (i32, i32) {
    %c0_i32 = arith.constant 0 : i32
    %c0_i32_0 = arith.constant 0 : i32
    %c0_i32_1 = arith.constant 0 : i32
    return %c0_i32, %c0_i32_0 : i32, i32
  }
  func.func @transform_3(%arg0: i32, %arg1: i32) -> (i32, i32) {
    %c0_i32 = arith.constant 0 : i32
    %c0_i32_0 = arith.constant 0 : i32
    return %c0_i32, %arg1 : i32, i32
  }
  func.func @transform_4(%arg0: i32, %arg1: i32) -> (i32, i32) {
    %c0_i32 = arith.constant 0 : i32
    %c0_i32_0 = arith.constant 0 : i32
    return %c0_i32, %arg1 : i32, i32
  }
  func.func @transform_5(%arg0: i32, %arg1: i32) -> (i32, i32) {
    %c0_i32 = arith.constant 0 : i32
    %c0_i32_0 = arith.constant 0 : i32
    return %c0_i32, %arg1 : i32, i32
  }
  func.func @transform_6(%arg0: i32, %arg1: i32) -> (i32, i32) {
    %c0_i32 = arith.constant 0 : i32
    %c0_i32_0 = arith.constant 0 : i32
    return %c0_i32, %arg1 : i32, i32
  }
  func.func @transform_7(%arg0: i32, %arg1: i32) -> (i32, i32) {
    %c0_i32 = arith.constant 0 : i32
    %c0_i32_0 = arith.constant 0 : i32
    return %c0_i32, %arg1 : i32, i32
  }
  func.func @transform_8(%arg0: i32, %arg1: i32) -> (i32, i32) {
    %c0_i32 = arith.constant 0 : i32
    %c0_i32_0 = arith.constant 0 : i32
    return %c0_i32, %arg1 : i32, i32
  }
  func.func @transform_9(%arg0: i32, %arg1: i32) -> (i32, i32) {
    %c0_i32 = arith.constant 0 : i32
    return %arg0, %arg1 : i32, i32
  }
  func.func @transform_10(%arg0: i32, %arg1: i32) -> (i32, i32) {
    %c0_i32 = arith.constant 0 : i32
    return %arg0, %arg1 : i32, i32
  }
  func.func @transform_11(%arg0: i32, %arg1: i32) -> (i32, i32) {
    %c0_i32 = arith.constant 0 : i32
    return %arg0, %arg1 : i32, i32
  }
}

</mosaic_0001>

<bundles_post_ra>
// kernel: tpu_custom_call.1
= control target key start
LH: loop header
LB: loop body
LE: loop exit
PB: predicated region body
PF: predicated region fallthrough
CT: control target
= control target key end

     0   :  { %17 = vsyncpa [#allocation3], 0  ;;  %s812_s0 = inlined_call_operand.hbm [shape: f32[16,32], index: 0, kind: input, shape index: {}]   ;;  %s813_s1 = inlined_call_operand.vmem [shape: f32[1,32], index: 1, kind: input, shape index: {}]   ;;  %s814_s2 = inlined_call_operand.vmem [shape: f32[1,32], index: 2, kind: input, shape index: {}]   ;;  %s815_s3 = inlined_call_operand.hbm [shape: bf16[32,32], index: 3, kind: input, shape index: {}]   ;;  %s816_s4 = inlined_call_operand.hbm [shape: bf16[32,32], index: 4, kind: input, shape index: {}]   ;;  %s817_s5 = inlined_call_operand.vmem [shape: bf16[32,32], index: 5, kind: input, shape index: {}]   ;;  %s818_s6 = inlined_call_operand.vmem [shape: f32[1,32], index: 6, kind: input, shape index: {}]   ;;  %s819_s7 = inlined_call_operand.vmem [shape: f32[1,32], index: 7, kind: input, shape index: {}]   ;;  %s820_s8 = inlined_call_operand.vmem [shape: f32[1,32], index: 8, kind: input, shape index: {}]   ;;  %s821_s9 = inlined_call_operand.hbm [shape: f32[16,32], index: 9, kind: output, shape index: {0}]   ;;  %s822_s10 = inlined_call_operand.hbm [shape: f32[16,32], index: 10, kind: output, shape index: {1}]   ;;  %s823_s11 = inlined_call_operand.hbm [shape: f32[16,32], index: 11, kind: output, shape index: {2}]  }
   0x1   :  { %18 = vsyncpa [#allocation6], 0 }
   0x2   :  { %19 = vsyncpa [#allocation4], 0 }
   0x3   :  { %20 = vsyncpa [#allocation10], 0  ;;  %s606_s17 = smov [#allocation5]   ;;  %s466_s21 = scalar_lea.hbm %s815_s3, 256 }
   0x4   :  { %s42_s18 = sshll.u32 %s606_s17, 4  ;;  %p467_p0 = scmp.ne.s32.totalorder %s815_s3, %s466_s21  ;;  %s43_s18 = int_to_ptr.vmem [resolvable:$true] %s42_s18 }
   0x5   :  { %p470_p1 = scmp.lt.u32.totalorder %s466_s21, %s815_s3 }
   0x7   :  { %p472_p2 = pnand %p470_p1, %p467_p0 }
   0x9   :  { %475 = shalt.err (!%p472_p2)
}
   0xa   :  { %s476_s26 = scalar_lea.vmem %s43_s18, 256  ;;  %p481_p4 = scmp.lt.s32.totalorder %s43_s18, %s43_s18 }
   0xb   :  { %p477_p3 = scmp.ne.s32.totalorder %s43_s18, %s476_s26  ;;  %p482_p5 = scmp.lt.s32.totalorder %s476_s26, %s476_s26 }
   0xd   :  { %p483_p6 = por %p482_p5, %p481_p4 }
   0xf   :  { %p484_p7 = pnand %p483_p6, %p477_p3 }
  0x11   :  { %487 = shalt.err (!%p484_p7)
}
  0x12   :  { %s607_s27 = smov 64   ;;  %s608_s28 = smov 4  }
  0x13   :  { %48 = dma.hbm_to_vmem [thread:$0]  %s815_s3, 256, %s43_s18, [#allocation6], %s607_s27, %s607_s27, %s608_s28  }
  0x14   :  { %s609_s12 = smov [#allocation2]   ;;  %s488_s16 = scalar_lea.hbm %s812_s0, 256 }
  0x15   :  { %s26_s13 = sshll.u32 %s609_s12, 4  ;;  %p489_p8 = scmp.ne.s32.totalorder %s812_s0, %s488_s16  ;;  %s27_s13 = int_to_ptr.vmem [resolvable:$true] %s26_s13 }
  0x16   :  { %p492_p9 = scmp.lt.u32.totalorder %s488_s16, %s812_s0 }
  0x18   :  { %p494_p10 = pnand %p492_p9, %p489_p8 }
  0x1a   :  { %497 = shalt.err (!%p494_p10)
}
  0x1b   :  { %s498_s22 = scalar_lea.vmem %s27_s13, 256  ;;  %p503_p12 = scmp.lt.s32.totalorder %s27_s13, %s27_s13 }
  0x1c   :  { %p499_p11 = scmp.ne.s32.totalorder %s27_s13, %s498_s22  ;;  %p504_p13 = scmp.lt.s32.totalorder %s498_s22, %s498_s22 }
  0x1e   :  { %p505_p0 = por %p504_p13, %p503_p12 }
  0x20   :  { %p506_p1 = pnand %p505_p0, %p499_p11 }
  0x22   :  { %509 = shalt.err (!%p506_p1)
}
  0x23   :  { %s610_s3 = smov 128   ;;  %s611_s18 = smov 8  }
  0x24   :  { %32 = dma.hbm_to_vmem [thread:$0]  %s812_s0, 256, %s27_s13, [#allocation3], %s610_s3, %s610_s3, %s611_s18  }
  0x25   :  { %s612_s25 = smov [#allocation7]   ;;  %s510_s12 = scalar_lea.hbm %s816_s4, 256 }
  0x26   :  { %s54_s26 = sshll.u32 %s612_s25, 4  ;;  %p511_p2 = scmp.ne.s32.totalorder %s816_s4, %s510_s12  ;;  %s55_s26 = int_to_ptr.vmem [resolvable:$true] %s54_s26 }
  0x27   :  { %p514_p3 = scmp.lt.u32.totalorder %s510_s12, %s816_s4 }
  0x29   :  { %p516_p4 = pnand %p514_p3, %p511_p2 }
  0x2b   :  { %519 = shalt.err (!%p516_p4)
}
  0x2c   :  { %s520_s19 = scalar_lea.vmem %s55_s26, 256  ;;  %p525_p6 = scmp.lt.s32.totalorder %s55_s26, %s55_s26 }
  0x2d   :  { %p521_p5 = scmp.ne.s32.totalorder %s55_s26, %s520_s19  ;;  %p526_p7 = scmp.lt.s32.totalorder %s520_s19, %s520_s19 }
  0x2f   :  { %p527_p8 = por %p526_p7, %p525_p6 }
  0x31   :  { %p528_p9 = pnand %p527_p8, %p521_p5 }
  0x33   :  { %531 = shalt.err (!%p528_p9)
}
  0x34   :  { %60 = dma.hbm_to_vmem [thread:$0]  %s816_s4, 256, %s55_s26, [#allocation6], %s607_s27, %s607_s27, %s608_s28  }
  0x35   :  { %598 = dma.done.wait [#allocation3], 256  }
  0x36   :  { %599 = vsyncadd [#allocation3], 4294967040 }
  0x37   :  { %600 = dma.done.wait [#allocation6], 512  }
  0x38   :  { %601 = vsyncadd [#allocation6], 4294966784  ;;  %vm81_vm0 = vcmask 261120   ;;  %v79_v0 = vld [vmem:[#allocation2] sm:$0xff]  ;;  %v80_v1 = vld [vmem:[#allocation2 + $0x8] sm:$0xff]  ;;  %v613_v16 = vmov 0.0  }
  0x39   :  { %v82_v2 = vsel %vm81_vm0, %v79_v0, 0.0  ;;  %v85_v3 = vsel %vm81_vm0, %v80_v1, 0.0  ;;  %v452_v14 = vld [vmem:[#allocation5] sm:$0xff]   ;;  %v453_v15 = vld [vmem:[#allocation7] sm:$0xff]   ;;  %416 = vmatprep.subr.bf16.mxu0 %v613_v16  ;;  %424 = vmatprep.subr.bf16.mxu1 %v613_v16  ;;  %v454_v17 = vld [vmem:[#allocation5 + $0x8] sm:$0xff]   ;;  %vm614_vm1 = vmmov 0  }
  0x3a   :  { %83 = vadd.xlane.f32.xlu0 %v82_v2  ;;  %417 = vmatpush3.bf16.msra.mxu0 %v452_v14  ;;  %v455_v18 = vld [vmem:[#allocation7 + $0x8] sm:$0xff]   ;;  %v393_v35 = vld [vmem:[%s813_s1] ss:$0 sm:$0xff]  ;;  %s615_s29 = smov [#allocation9]  }
  0x3b   :  { %425 = vmatpush3.bf16.msra.mxu1 %v453_v15  ;;  %418 = vmatprep.subr.bf16.mxu0 %v613_v16  ;;  %v394_v41 = vld [vmem:[%s814_s2] ss:$0 sm:$0xff]  ;;  %v457_v47 = vld [vmem:[%s817_s5 + $0x8] sm:$0xff]   ;;  %s361_s30 = sshll.u32 %s615_s29, 4  ;;  %s362_s30 = int_to_ptr.vmem [resolvable:$true] %s361_s30 }
  0x3c   :  { %426 = vmatprep.subr.bf16.mxu1 %v613_v16  ;;  %420 = vmatprep.mubr.msk.bf16.mxu0 %vm614_vm1, %v613_v16  ;;  %v456_v45 = vld [vmem:[%s817_s5] sm:$0xff]   ;;  %s616_s5 = smov [#allocation8]   ;;  %s532_s14 = scalar_lea.vmem %s362_s30, 256 }
  0x3d   :  { %428 = vmatprep.mubr.msk.bf16.mxu1 %vm614_vm1, %v613_v16  ;;  %v395_v48 = vld [vmem:[%s818_s6] ss:$0 sm:$0xff]  ;;  %s349_s12 = sshll.u32 %s616_s5, 4  ;;  %p533_p10 = scmp.ne.s32.totalorder %s362_s30, %s532_s14  ;;  %s753_s12 = int_to_ptr.vmem [resolvable:$true] %s349_s12 }
  0x3e   :  { %86 = vadd.xlane.f32.xlu0 %v85_v3  ;;  %419 = vmatpush3.bf16.msra.mxu0 %v454_v17  ;;  %v399_v49 = vld [vmem:[%s819_s7] ss:$0 sm:$0xff]  ;;  %p537_p11 = scmp.lt.s32.totalorder %s362_s30, %s362_s30  ;;  %p538_p12 = scmp.lt.s32.totalorder %s532_s14, %s532_s14 }
  0x3f   :  { %427 = vmatpush3.bf16.msra.mxu1 %v455_v18  ;;  %432 = vmatprep.subr.bf16.mxu0 %v613_v16  ;;  %v403_v62 = vld [vmem:[%s820_s8] ss:$0 sm:$0xff] }
  0x40   :  { %p539_p13 = por %p538_p12, %p537_p11 }
  0x42   :  { %p540_p0 = pnand %p539_p13, %p533_p10 }
  0xc7   :  { %v84_v4 = vpop.xlane.xlu0 %83 }
  0xc8   :  { %v89_v5 = vmul.f32 0.03125, %v84_v4 }
  0xca   :  { %v91_v6 = vsub.f32 %v79_v0, %v89_v5 }
  0xcb   :  { %v87_v7 = vpop.xlane.xlu0 %86 }
  0xcc   :  { %v90_v8 = vmul.f32 0.03125, %v87_v7  ;;  %v93_v9 = vmul.f32 %v91_v6, %v91_v6  ;;  %v125_v37 = vmul.f32 %v393_v35, %v91_v6 }
  0xce   :  { %v92_v10 = vsub.f32 %v80_v1, %v90_v8  ;;  %v95_v11 = vsel %vm81_vm0, %v93_v9, 0.0 }
  0xcf   :  { %96 = vadd.xlane.f32.xlu1 %v95_v11 }
  0xd0   :  { %v94_v12 = vmul.f32 %v92_v10, %v92_v10  ;;  %v126_v38 = vmul.f32 %v393_v35, %v92_v10 }
  0xd2   :  { %v98_v13 = vsel %vm81_vm0, %v94_v12, 0.0 }
  0xd3   :  { %99 = vadd.xlane.f32.xlu1 %v98_v13 }
 0x15c   :  { %v97_v19 = vpop.xlane.xlu1 %96 }
 0x15d   :  { %v102_v20 = vmul.f32 0.032258064, %v97_v19 }
 0x15f   :  { %458 = vrsqrt.f32 %v102_v20  ;;  %vm106_vm2 = vcmp.eq.f32.partialorder %v102_v20, inf  ;;  %v109_v25 = vand.u32 2147483648, %v102_v20  ;;  %vm108_vm3 = vcmp.eq.f32.partialorder %v102_v20, 0.0 }
 0x160   :  { %v100_v21 = vpop.xlane.xlu1 %99 }
 0x161   :  { %v103_v22 = vmul.f32 0.032258064, %v100_v21 }
 0x163   :  { %460 = vrsqrt.f32 %v103_v22  ;;  %vm113_vm4 = vcmp.eq.f32.partialorder %v103_v22, inf  ;;  %v116_v31 = vand.u32 2147483648, %v103_v22  ;;  %vm115_vm5 = vcmp.eq.f32.partialorder %v103_v22, 0.0 }
 0x169   :  { %v459_v23 = vpop.eup %458 }
 0x16a   :  { %v105_v24 = vmul.f32 %v459_v23, %v102_v20 }
 0x16c   :  { %v107_v26 = vsel %vm106_vm2, %v102_v20, %v105_v24 }
 0x16d   :  { %v461_v27 = vpop.eup %460  ;;  %v110_v28 = vsel %vm108_vm3, %v109_v25, %v107_v26 }
 0x16e   :  { %v127_v29 = vadd.f32 1e-06, %v110_v28  ;;  %v112_v30 = vmul.f32 %v461_v27, %v103_v22 }
 0x170   :  { %462 = vrcp.f32 %v127_v29  ;;  %v114_v32 = vsel %vm113_vm4, %v103_v22, %v112_v30 }
 0x171   :  { %v117_v33 = vsel %vm115_vm5, %v116_v31, %v114_v32 }
 0x172   :  { %v128_v34 = vadd.f32 1e-06, %v117_v33 }
 0x174   :  { %464 = vrcp.f32 %v128_v34 }
 0x17a   :  { %v463_v36 = vpop.eup %462 }
 0x17b   :  { %v130_v39 = vmul.f32 %v463_v36, %v125_v37 }
 0x17d   :  { %v140_v43 = vadd.f32 %v394_v41, %v130_v39 }
 0x17e   :  { %v465_v40 = vpop.eup %464 }
 0x17f   :  { %v132_v42 = vmul.f32 %v465_v40, %v126_v38 }
 0x181   :  { %v141_v44 = vadd.f32 %v394_v41, %v132_v42 }
 0x183   :  { %v142_v46 = vpack.c.bf16 %v141_v44, %v140_v43 }
 0x185   :  { %421 = vmatmul.mubr.msk.bf16.vlgmr.msra.gmra.mrb[0].mxu0 %vm81_vm0, %v142_v46  ;;  %429 = vmatmul.mubr.msk.bf16.vlgmr.msra.gmra.mrb[0].mxu1 %vm81_vm0, %v142_v46 }
 0x186   :  { %433 = vmatpush3.bf16.msra.mxu0 %v456_v45  ;;  %436 = vmatprep.mubr.msk.bf16.mxu0 %vm614_vm1, %v613_v16 }
 0x187   :  { %434 = vmatprep.subr.bf16.mxu0 %v613_v16 }
 0x18a   :  { %435 = vmatpush3.bf16.msra.mxu0 %v457_v47 }
 0x18d   :  { %437 = vmatmul.mubr.msk.bf16.vlgmr.msra.gmra.mrb[4].mxu0 %vm81_vm0, %v142_v46 }
 0x258   :  { %v203_v50 = vpop.f32.mrb[0].mxu0  ;;  %v269_v51 = vpop.f32.mrb[0].mxu1 }
 0x259   :  { %v204_v52 = vadd.f32 %v395_v48, %v203_v50  ;;  %v270_v53 = vadd.f32 %v399_v49, %v269_v51  ;;  %v422_v54 = vpop.f32.mrb[1].mxu0  ;;  %v430_v55 = vpop.f32.mrb[1].mxu1 }
 0x25a   :  { %v206_v56 = vpop.f32.mrb[2].mxu0  ;;  %v272_v57 = vpop.f32.mrb[2].mxu1 }
 0x25b   :  { %210 = vst.msk [vmem:[#allocation8] sm:$0xff] %vm81_vm0, %v204_v52  ;;  %276 = vst.msk [vmem:[#allocation9] sm:$0xff] %vm81_vm0, %v270_v53  ;;  %v207_v58 = vadd.f32 %v395_v48, %v206_v56  ;;  %v273_v59 = vadd.f32 %v399_v49, %v272_v57  ;;  %v423_v60 = vpop.f32.mrb[3].mxu0  ;;  %v431_v61 = vpop.f32.mrb[3].mxu1 }
 0x25d   :  { %211 = vst.msk [vmem:[#allocation8 + $0x8] sm:$0xff] %vm81_vm0, %v207_v58  ;;  %277 = vst.msk [vmem:[#allocation9 + $0x8] sm:$0xff] %vm81_vm0, %v273_v59 }
 0x25e   :  { %543 = shalt.err (!%p540_p0)
}
 0x25f   :  { %s544_s17 = scalar_lea.hbm %s822_s10, 256 }
 0x260   :  { %p545_p1 = scmp.ne.s32.totalorder %s822_s10, %s544_s17  ;;  %p548_p2 = scmp.lt.u32.totalorder %s544_s17, %s822_s10 }
 0x262   :  { %p550_p3 = pnand %p548_p2, %p545_p1 }
 0x264   :  { %553 = shalt.err (!%p550_p3)
}
 0x265   :  { %367 = dma.vmem_to_hbm [thread:$0]  %s362_s30, 256, %s822_s10, [#allocation10], %s610_s3, %s610_s3, %s611_s18  }
 0x266   :  { %s554_s28 = scalar_lea.vmem %s753_s12, 256  ;;  %p559_p5 = scmp.lt.s32.totalorder %s753_s12, %s753_s12 }
 0x267   :  { %p555_p4 = scmp.ne.s32.totalorder %s753_s12, %s554_s28  ;;  %p560_p6 = scmp.lt.s32.totalorder %s554_s28, %s554_s28 }
 0x269   :  { %p561_p7 = por %p560_p6, %p559_p5 }
 0x26b   :  { %p562_p8 = pnand %p561_p7, %p555_p4 }
 0x26d   :  { %565 = shalt.err (!%p562_p8)
}
 0x26e   :  { %s566_s22 = scalar_lea.hbm %s821_s9, 256 }
 0x26f   :  { %p567_p9 = scmp.ne.s32.totalorder %s821_s9, %s566_s22  ;;  %p570_p10 = scmp.lt.u32.totalorder %s566_s22, %s821_s9 }
 0x271   :  { %p572_p11 = pnand %p570_p10, %p567_p9 }
 0x273   :  { %575 = shalt.err (!%p572_p11)
}
 0x274   :  { %355 = dma.vmem_to_hbm [thread:$0]  %s753_s12, 256, %s821_s9, [#allocation4], %s610_s3, %s610_s3, %s611_s18   ;;  %v335_v63 = vpop.f32.mrb[4].mxu0 }
 0x275   :  { %s617_s26 = smov [#allocation11]   ;;  %v336_v0 = vadd.f32 %v403_v62, %v335_v63  ;;  %v438_v1 = vpop.f32.mrb[5].mxu0 }
 0x276   :  { %s373_s29 = sshll.u32 %s617_s26, 4  ;;  %v338_v2 = vpop.f32.mrb[6].mxu0  ;;  %s374_s29 = int_to_ptr.vmem [resolvable:$true] %s373_s29 }
 0x277   :  { %342 = vst.msk [vmem:[#allocation11] sm:$0xff] %vm81_vm0, %v336_v0  ;;  %v339_v3 = vadd.f32 %v403_v62, %v338_v2  ;;  %v439_v4 = vpop.f32.mrb[7].mxu0  ;;  %s576_s30 = scalar_lea.vmem %s374_s29, 256  ;;  %p581_p13 = scmp.lt.s32.totalorder %s374_s29, %s374_s29 }
 0x278   :  { %p577_p12 = scmp.ne.s32.totalorder %s374_s29, %s576_s30  ;;  %p582_p0 = scmp.lt.s32.totalorder %s576_s30, %s576_s30 }
 0x279   :  { %343 = vst.msk [vmem:[#allocation11 + $0x8] sm:$0xff] %vm81_vm0, %v339_v3 }
 0x27a   :  { %p583_p1 = por %p582_p0, %p581_p13 }
 0x27c   :  { %p584_p2 = pnand %p583_p1, %p577_p12 }
 0x27e   :  { %587 = shalt.err (!%p584_p2)
}
 0x27f   :  { %s588_s12 = scalar_lea.hbm %s823_s11, 256 }
 0x280   :  { %p589_p3 = scmp.ne.s32.totalorder %s823_s11, %s588_s12  ;;  %p592_p4 = scmp.lt.u32.totalorder %s588_s12, %s823_s11 }
 0x282   :  { %p594_p5 = pnand %p592_p4, %p589_p3 }
 0x284   :  { %597 = shalt.err (!%p594_p5)
}
 0x285   :  { %379 = dma.vmem_to_hbm [thread:$0]  %s374_s29, 256, %s823_s11, [#allocation10], %s610_s3, %s610_s3, %s611_s18  }
 0x286   :  { %602 = dma.done.wait [#allocation4], 256  }
 0x287   :  { %603 = vsyncadd [#allocation4], 4294967040 }
 0x288   :  { %604 = dma.done.wait [#allocation10], 512  }
 0x289   :  { %605 = vsyncadd [#allocation10], 4294966784 }
 0x28a   :  { %389 = vsyncpa [#allocation3], 1 }
 0x28b   :  { %390 = vsyncpa [#allocation6], 1 }
 0x28c   :  { %391 = vsyncpa [#allocation4], 1 }
 0x28d   :  { %392 = vsyncpa [#allocation10], 1 }

</bundles_post_ra>
